<compile_context>
chip_gen: v6e
topology: v6e:2x2x1
jax: 0.10.0
libtpu: 0.0.40
codegen_flags: <defaults>
</compile_context>

<pallas_src>
import functools

import jax
import jax.numpy as jnp
from jax.experimental import pallas as pl
from jax.experimental.pallas import tpu as pltpu

d_model = 64
d_ff = 256
LN_EPS = 1e-5


def _ffn_ln_kernel(x_ref, w1_ref, w2_ref, o_ref, *, matmul_dtype):
    # x_ref: (tm, d_model); w1_ref: (d_model, d_ff); w2_ref: (d_ff, d_model)
    # Weights arrive already cast to matmul_dtype by the wrapper.
    x = x_ref[...].astype(jnp.float32)

    # Linear(d_model -> d_ff, bias=False) + ReLU   (MXU, f32 accumulation)
    h = jnp.dot(x.astype(matmul_dtype), w1_ref[...],
                preferred_element_type=jnp.float32)
    h = jnp.maximum(h, 0.0)

    # Linear(d_ff -> d_model, bias=False) + residual (residual in f32)
    y = jnp.dot(h.astype(matmul_dtype), w2_ref[...],
                preferred_element_type=jnp.float32) + x

    # LayerNorm over last dim: gamma=1, beta=0, eps=1e-5, biased variance.
    # One-pass variance: E[y^2] - mu^2 (clamped at 0 against cancellation).
    inv_d = jnp.float32(1.0 / d_model)
    mu = jnp.sum(y, axis=-1, keepdims=True) * inv_d
    var = jnp.sum(y * y, axis=-1, keepdims=True) * inv_d - mu * mu
    var = jnp.maximum(var, 0.0)
    o_ref[...] = ((y - mu) * jax.lax.rsqrt(var + LN_EPS)).astype(o_ref.dtype)


@functools.partial(jax.jit, static_argnames=("tm", "matmul_dtype"))
def poswise_ffn(inputs, w1, w2, *, tm=2048, matmul_dtype=jnp.bfloat16):
    """inputs: [batch, seq_len, d_model] -> [batch, seq_len, d_model]."""
    b, s, dm = inputs.shape
    assert dm == d_model
    rows = b * s
    x2d = inputs.reshape(rows, dm)          # free contiguous view, no HBM copy

    # Cast the (tiny) weights once in the wrapper so the MXU sees bf16
    # operands; accumulation stays f32 inside the kernel.
    w1c = w1.astype(matmul_dtype)
    w2c = w2.astype(matmul_dtype)

    # Row tile: as large as possible for DMA efficiency, but keep >=2 grid
    # steps so dimension_semantics=('parallel',) can use both TCs on v7x.
    # Round to the 8-sublane granularity; no padding of the activations —
    # the ragged final block's out-of-bounds store is masked by Pallas.
    half_rows = ((-(-rows // 2) + 7) // 8) * 8
    tm = max(8, min(tm, half_rows))
    grid = (pl.cdiv(rows, tm),)

    out2d = pl.pallas_call(
        functools.partial(_ffn_ln_kernel, matmul_dtype=matmul_dtype),
        out_shape=jax.ShapeDtypeStruct((rows, dm), inputs.dtype),
        grid_spec=pltpu.PrefetchScalarGridSpec(
            num_scalar_prefetch=0,
            grid=grid,
            in_specs=[
                pl.BlockSpec((tm, d_model), lambda i: (i, 0)),
                pl.BlockSpec((d_model, d_ff), lambda i: (0, 0)),
                pl.BlockSpec((d_ff, d_model), lambda i: (0, 0)),
            ],
            out_specs=pl.BlockSpec((tm, d_model), lambda i: (i, 0)),
        ),
        compiler_params=pltpu.CompilerParams(
            dimension_semantics=("parallel",)),
    )(x2d, w1c, w2c)

    return out2d.reshape(b, s, dm)


def init_params(key):
    """Deterministic init mimicking nn.Linear's U(-1/sqrt(fan_in), 1/sqrt(fan_in))."""
    k1, k2 = jax.random.split(key)
    bound1 = 1.0 / (d_model ** 0.5)
    bound2 = 1.0 / (d_ff ** 0.5)
    # Stored as [in, out] so the kernel does x @ W directly.
    w1 = jax.random.uniform(k1, (d_model, d_ff), jnp.float32, -bound1, bound1)
    w2 = jax.random.uniform(k2, (d_ff, d_model), jnp.float32, -bound2, bound2)
    return w1, w2


def reference(inputs, w1, w2, matmul_dtype=jnp.float32):
    """Pure-JAX reference mirroring the kernel's matmul dtype."""
    x = inputs.astype(jnp.float32)
    h = jnp.dot(x.astype(matmul_dtype), w1.astype(matmul_dtype),
                preferred_element_type=jnp.float32)
    h = jnp.maximum(h, 0.0)
    y = jnp.dot(h.astype(matmul_dtype), w2.astype(matmul_dtype),
                preferred_element_type=jnp.float32) + x
    mu = jnp.mean(y, axis=-1, keepdims=True)
    var = jnp.mean((y - mu) ** 2, axis=-1, keepdims=True)
    return (y - mu) * jax.lax.rsqrt(var + LN_EPS)


if __name__ == "__main__":
    key = jax.random.PRNGKey(0)
    k_in, k_w, k_in2 = jax.random.split(key, 3)

    w1, w2 = init_params(k_w)

    # Case 1: batch=2, seq_len=8 (rows tile evenly).
    x1 = jax.random.normal(k_in, (2, 8, d_model), jnp.float32)
    out_bf16 = jax.block_until_ready(poswise_ffn(x1, w1, w2))
    assert out_bf16.shape == (2, 8, d_model)

    ref_bf16 = reference(x1, w1, w2, matmul_dtype=jnp.bfloat16)
    ref_f32 = reference(x1, w1, w2, matmul_dtype=jnp.float32)
    assert jnp.allclose(out_bf16, ref_bf16, atol=2e-3, rtol=2e-3), \
        "mismatch vs bf16-matmul reference"
    assert jnp.allclose(out_bf16, ref_f32, atol=1e-2, rtol=1e-2), \
        "mismatch vs f32 module reference"

    # f32 matmul path preserves the module's numerics tightly.
    out_f32 = jax.block_until_ready(
        poswise_ffn(x1, w1, w2, matmul_dtype=jnp.float32))
    assert jnp.allclose(out_f32, ref_f32, atol=1e-3, rtol=1e-3), \
        "mismatch vs f32 reference (f32 path)"

    # Case 2: batch=3, seq_len=5 -> 15 rows (not a multiple of 8): exercises
    # the un-padded ragged final block with a masked store.
    x2 = jax.random.normal(k_in2, (3, 5, d_model), jnp.float32)
    out2 = jax.block_until_ready(poswise_ffn(x2, w1, w2))
    ref2 = reference(x2, w1, w2, matmul_dtype=jnp.bfloat16)
    assert out2.shape == (3, 5, d_model)
    assert bool(jnp.isfinite(out2).all())
    assert jnp.allclose(out2, ref2, atol=2e-3, rtol=2e-3), \
        "mismatch vs reference on ragged rows"

    print("KERNEL_OK")
</pallas_src>

<mosaic_0001>
module attributes {stable_mosaic.version = 11 : i64} {
  func.func @_ffn_ln_kernel(%arg0: i32, %arg1: memref<8x64xf32, #tpu.memory_space<vmem>>, %arg2: memref<64x256xbf16, #tpu.memory_space<vmem>>, %arg3: memref<256x64xbf16, #tpu.memory_space<vmem>>, %arg4: memref<8x64xf32, #tpu.memory_space<vmem>>) attributes {dimension_semantics = [#tpu.dimension_semantics<parallel>], iteration_bounds = array<i64: 2>, scalar_prefetch = 0 : i64, scratch_operands = 0 : i64, tpu.core_type = #tpu.core_type<tc>, window_params = [{transform_indices = @transform_0, window_bounds = array<i64: 8, 64>}, {pipeline_mode = #tpu.pipeline_mode<synchronous>, transform_indices = @transform_1, window_bounds = array<i64: 64, 256>}, {pipeline_mode = #tpu.pipeline_mode<synchronous>, transform_indices = @transform_2, window_bounds = array<i64: 256, 64>}, {transform_indices = @transform_3, window_bounds = array<i64: 8, 64>}]} {
    %c0 = arith.constant 0 : index
    %c0_0 = arith.constant 0 : index
    %0 = vector.load %arg1[%c0, %c0_0] : memref<8x64xf32, #tpu.memory_space<vmem>>, vector<8x64xf32>
    %1 = arith.truncf %0 : vector<8x64xf32> to vector<8x64xbf16>
    %c0_1 = arith.constant 0 : index
    %c0_2 = arith.constant 0 : index
    %2 = vector.load %arg2[%c0_1, %c0_2] : memref<64x256xbf16, #tpu.memory_space<vmem>>, vector<64x256xbf16>
    %cst = arith.constant dense<0.000000e+00> : vector<8x256xf32>
    %3 = tpu.matmul %1, %2, %cst {dimension_numbers = #tpu.dot_dimension_numbers<[1], [0], [0], [1], [0, 0, 1, 1], [], []>} : vector<8x64xbf16>, vector<64x256xbf16>, vector<8x256xf32> -> vector<8x256xf32>
    %cst_3 = arith.constant 0.000000e+00 : f32
    %4 = vector.broadcast %cst_3 : f32 to vector<8x256xf32>
    %5 = arith.maximumf %3, %4 : vector<8x256xf32>
    %6 = arith.truncf %5 : vector<8x256xf32> to vector<8x256xbf16>
    %c0_4 = arith.constant 0 : index
    %c0_5 = arith.constant 0 : index
    %7 = vector.load %arg3[%c0_4, %c0_5] : memref<256x64xbf16, #tpu.memory_space<vmem>>, vector<256x64xbf16>
    %cst_6 = arith.constant dense<0.000000e+00> : vector<8x64xf32>
    %8 = tpu.matmul %6, %7, %cst_6 {dimension_numbers = #tpu.dot_dimension_numbers<[1], [0], [0], [1], [0, 0, 1, 1], [], []>} : vector<8x256xbf16>, vector<256x64xbf16>, vector<8x64xf32> -> vector<8x64xf32>
    %9 = arith.addf %8, %0 : vector<8x64xf32>
    %cst_7 = arith.constant dense<0.000000e+00> : vector<8xf32>
    %10 = vector.multi_reduction <add>, %9, %cst_7 [1] : vector<8x64xf32> to vector<8xf32>
    %11 = vector.shape_cast %10 : vector<8xf32> to vector<8x1xf32>
    %cst_8 = arith.constant 1.562500e-02 : f32
    %12 = vector.broadcast %cst_8 : f32 to vector<8x1xf32>
    %13 = arith.mulf %11, %12 : vector<8x1xf32>
    %14 = arith.mulf %9, %9 : vector<8x64xf32>
    %cst_9 = arith.constant dense<0.000000e+00> : vector<8xf32>
    %15 = vector.multi_reduction <add>, %14, %cst_9 [1] : vector<8x64xf32> to vector<8xf32>
    %16 = vector.shape_cast %15 : vector<8xf32> to vector<8x1xf32>
    %cst_10 = arith.constant 1.562500e-02 : f32
    %17 = vector.broadcast %cst_10 : f32 to vector<8x1xf32>
    %18 = arith.mulf %16, %17 : vector<8x1xf32>
    %19 = arith.mulf %13, %13 : vector<8x1xf32>
    %20 = arith.subf %18, %19 : vector<8x1xf32>
    %cst_11 = arith.constant 0.000000e+00 : f32
    %21 = vector.broadcast %cst_11 : f32 to vector<8x1xf32>
    %22 = arith.maximumf %20, %21 : vector<8x1xf32>
    %23 = vector.broadcast %13 : vector<8x1xf32> to vector<8x64xf32>
    %24 = arith.subf %9, %23 : vector<8x64xf32>
    %cst_12 = arith.constant 9.99999974E-6 : f32
    %25 = vector.broadcast %cst_12 : f32 to vector<8x1xf32>
    %26 = arith.addf %22, %25 : vector<8x1xf32>
    %27 = math.rsqrt %26 : vector<8x1xf32>
    %28 = vector.broadcast %27 : vector<8x1xf32> to vector<8x64xf32>
    %29 = arith.mulf %24, %28 : vector<8x64xf32>
    %c0_13 = arith.constant 0 : index
    %c0_14 = arith.constant 0 : index
    %30 = vector.load %arg4[%c0_13, %c0_14] : memref<8x64xf32, #tpu.memory_space<vmem>>, vector<8x64xf32>
    tpu.vector_store %arg4[%c0_13, %c0_14], %29 {strides = array<i32>} : memref<8x64xf32, #tpu.memory_space<vmem>>, vector<8x64xf32>,
    return
  }
  func.func @transform_0(%arg0: i32) -> (i32, i32) {
    %c0_i32 = arith.constant 0 : i32
    %c0_i32_0 = arith.constant 0 : i32
    return %arg0, %c0_i32 : i32, i32
  }
  func.func @transform_1(%arg0: i32) -> (i32, i32) {
    %c0_i32 = arith.constant 0 : i32
    %c0_i32_0 = arith.constant 0 : i32
    %c0_i32_1 = arith.constant 0 : i32
    return %c0_i32, %c0_i32_0 : i32, i32
  }
  func.func @transform_2(%arg0: i32) -> (i32, i32) {
    %c0_i32 = arith.constant 0 : i32
    %c0_i32_0 = arith.constant 0 : i32
    %c0_i32_1 = arith.constant 0 : i32
    return %c0_i32, %c0_i32_0 : i32, i32
  }
  func.func @transform_3(%arg0: i32) -> (i32, i32) {
    %c0_i32 = arith.constant 0 : i32
    %c0_i32_0 = arith.constant 0 : i32
    return %arg0, %c0_i32 : i32, i32
  }
}

</mosaic_0001>

<bundles_post_ra>
// kernel: poswise_ffn.1
= control target key start
LH: loop header
LB: loop body
LE: loop exit
PB: predicated region body
PF: predicated region fallthrough
CT: control target
= control target key end

     0   :  { %8 = vsyncpa [#allocation3], 0  ;;  %s898_s0 = inlined_call_operand.vmem [shape: f32[16,64], index: 0, kind: input, shape index: {}]   ;;  %s899_s1 = inlined_call_operand.vmem [shape: bf16[64,256], index: 1, kind: input, shape index: {}]   ;;  %s900_s2 = inlined_call_operand.vmem [shape: bf16[256,64], index: 2, kind: input, shape index: {}]   ;;  %s901_s3 = inlined_call_operand.hbm [shape: f32[16,64], index: 3, kind: output, shape index: {}]  }
   0x1   :  { %10 = vsyncpa [#allocation3 + $0x1], 0  ;;  %s735_s12 = smov 0   ;;  %s737_s13 = smov 0  }
   0x2   :  { %s739_s14 = smov 0   ;;  %s741_s15 = smov 0  }
   0x3 LB: > { %s756_s16 = sadd.s32 4294967295, %s711_s15   ;;  %s524_s17 = sadd.s32 4294967294, %s711_s15   ;;  %s711_s15 = sphi %s741_s15, %s907_s15   ;;  %s707_s14 = sphi %s739_s14, %s906_s14   ;;  %s703_s13 = sphi %s737_s13, %s905_s13   ;;  %s699_s12 = sphi %s735_s12, %s904_s12  }
   0x4   : > { %s760_s18 = sadd.s32 1, %s711_s15   ;;  %s91_s19 = sadd.s32 1, %s707_s14 }
   0x5   : > { %s88_s20 = ssub.s32 %s711_s15, %s760_s18  ;;  %p101_p0 = scmp.ne.s32.totalorder %s707_s14, %s703_s13 }
   0x6   : > { %p89_p1 = scmp.eq.s32.totalorder %s88_s20, 0  ;;  %p102_p2 = scmp.eq.s32.totalorder %s756_s16, 1 }
   0x7   : > { %p107_p3 = scmp.ne.s32.totalorder %s703_s13, %s699_s12  ;;  %p108_p4 = scmp.eq.s32.totalorder %s524_s17, 1 }
   0x8   : > { %s771_s21 = scalar_select %p89_p1, %s707_s14, %s91_s19  }
   0x9   : > { %p773_p5 = por %p102_p2, %p101_p0  ;;  %p777_p6 = por %p108_p4, %p107_p3 }
   0xa   : > { %p527_p7 = scmp.ge.s32.totalorder %s711_s15, 1  ;;  %p139_p8 = scmp.lt.s32.totalorder %s711_s15, 3 }
   0xc   : > { %p140_p9 = pnand %p527_p7, %p139_p8 }
   0xd   : > { %p162_p10 = scmp.lt.s32.totalorder (!%p140_p9), %s756_s16, 1  ;;  %s159_s20 = sand.u32 (!%p140_p9), 1, %s703_s13  }
   0xe   : > { %143 = sbr.rel (%p140_p9) target bundleno = 615 (0x267), region = 32  ;;  %s528_s24 = sshll.u32 (!%p140_p9), %s159_s20, 3 }
   0xf   : > { %s556_s25 = sshll.u32 (!%p140_p9), %s756_s16, 7  ;;  %s161_s26 = scalar_lea.vmem (!%p140_p9), [#allocation2], %s528_s24 }
  0x10   : > { %s465_s27 = sshll.u32 (!%p140_p9), %s161_s26, 4  ;;  %s452_s4 = scalar_lea.sflag (!%p140_p9), [#allocation3], %s159_s20  ;;  %s466_s27 = int_to_ptr.vmem [resolvable:$true] %s465_s27 }
  0x11   : > { %s651_s5 = scalar_lea.vmem (!%p140_p9), %s466_s27, 128  ;;  %s714_s6 = smov (!%p140_p9), [#allocation2]  }
  0x12   : > { %p652_p11 = scmp.ne.s32.totalorder (!%p140_p9), %s466_s27, %s651_s5 }
  0x13   : > { %v621_v0 = vld [vmem:[%s899_s1 + $0x34] ss:$8 sps:$4 sm:$0xff]   ;;  %v623_v1 = vld [vmem:[%s899_s1 + $0x30] ss:$8 sps:$4 sm:$0xff]   ;;  %v713_v2 = vmov 0   ;;  %s163_s30 = scalar_select %p162_p10, %s756_s16, 1 }
  0x14   : > { %253 = vmatprep.mubr.bf16.mxu0 %v713_v2  ;;  %229 = vmatprep.subr.bf16.mxu0 %v621_v0  ;;  %v624_v3 = vld [vmem:[%s899_s1 + $0x24] ss:$8 sps:$4 sm:$0xff]   ;;  %v626_v4 = vld [vmem:[%s899_s1 + $0x20] ss:$8 sps:$4 sm:$0xff]   ;;  %v627_v5 = vld [vmem:[%s899_s1 + $0x14] ss:$8 sps:$4 sm:$0xff]   ;;  %p653_p12 = pnand %p652_p11, %p773_p5 }
  0x15   : > { %230 = vmatpush1.bf16.msra.mxu0 %v623_v1  ;;  %v629_v6 = vld [vmem:[%s899_s1 + $0x10] ss:$8 sps:$4 sm:$0xff]   ;;  %s529_s10 = sshll.u32 %s163_s30, 3  ;;  %v630_v7 = vld [vmem:[%s899_s1 + $0x4] ss:$8 sps:$4 sm:$0xff]   ;;  %vm217_vm0 = vcmask 523264   ;;  %s463_s30 = scalar_lea.hbm %s901_s3, %s556_s25 }
  0x16   : > { %231 = vmatprep.subr.bf16.mxu0 %v624_v3  ;;  %v633_v8 = vld [vmem:[%s900_s2 + $0x78] sm:$0xff]   ;;  %s165_s28 = scalar_lea.vmem %s898_s0, %s529_s10  ;;  %v635_v10 = vld [vmem:[%s900_s2 + $0x70] sm:$0xff]   ;;  %v632_v11 = vld [vmem:[%s899_s1] ss:$8 sps:$4 sm:$0xff]   ;;  %p654_p13 = pneg %p653_p12 }
  0x17   : > { %v634_v9 = vld [vmem:[%s900_s2 + $0x38] sm:$0xff]   ;;  %559 = vmatprep.subr.bf16.mxu1 %v633_v8  ;;  %v636_v12 = vld [vmem:[%s900_s2 + $0x30] sm:$0xff]   ;;  %v637_v13 = vld [vmem:[%s900_s2 + $0x68] sm:$0xff]   ;;  %s655_s16 = sshll.u32 %s714_s6, 4  ;;  %s656_s16 = int_to_ptr.vmem [resolvable:$false] %s655_s16 }
  0x18   : > { %560 = vmatpush3.bf16.msra.mxu1 %v634_v9  ;;  %v167_v14 = vld [vmem:[%s165_s28] sm:$0xff]  ;;  %v638_v15 = vld [vmem:[%s900_s2 + $0x28] sm:$0xff]   ;;  %v641_v19 = vld [vmem:[%s900_s2 + $0x58] sm:$0xff]   ;;  %s657_s7 = scalar_lea.vmem %s656_s16, 256  ;;  %p658_p0 = scmp.lt.s32.totalorder %s466_s27, %s656_s16 }
  0x19   : > { %232 = vmatpush1.bf16.msra.mxu0 %v626_v4  ;;  %561 = vmatprep.subr.bf16.mxu1 %v635_v10  ;;  %v168_v16 = vpack.c.bf16 %v167_v14, %v167_v14  ;;  %v639_v17 = vld [vmem:[%s900_s2 + $0x60] sm:$0xff]   ;;  %v642_v20 = vld [vmem:[%s900_s2 + $0x18] sm:$0xff]   ;;  %v643_v21 = vld [vmem:[%s900_s2 + $0x50] sm:$0xff]   ;;  %p659_p1 = scmp.lt.s32.totalorder %s657_s7, %s651_s5 }
  0x1a   : > { %233 = vmatprep.subr.bf16.mxu0 %v627_v5  ;;  %v640_v18 = vld [vmem:[%s900_s2 + $0x20] sm:$0xff]   ;;  %v644_v22 = vld [vmem:[%s900_s2 + $0x10] sm:$0xff]   ;;  %v645_v23 = vld [vmem:[%s900_s2 + $0x48] sm:$0xff]  }
  0x1b   : > { %v646_v24 = vld [vmem:[%s900_s2 + $0x8] sm:$0xff]   ;;  %v647_v25 = vld [vmem:[%s900_s2 + $0x40] sm:$0xff]   ;;  %p660_p2 = por %p659_p1, %p658_p0 }
  0x1c   : > { %562 = vmatpush3.bf16.msra.mxu1 %v636_v12  ;;  %v648_v26 = vld [vmem:[%s900_s2] sm:$0xff]  }
  0x1d   : > { %234 = vmatpush1.bf16.msra.mxu0 %v629_v6  ;;  %563 = vmatprep.subr.bf16.mxu1 %v637_v13  ;;  %p661_p3 = pnand %p660_p2, %p654_p13 }
  0x1e   : > { %235 = vmatprep.subr.bf16.mxu0 %v630_v7 }
  0x20   : > { %564 = vmatpush3.bf16.msra.mxu1 %v638_v15 }
  0x21   : > { %236 = vmatpush1.bf16.msra.mxu0 %v632_v11  ;;  %565 = vmatprep.subr.bf16.mxu1 %v639_v17 }
  0x24   : > { %538 = vmatmul.mubr.msk.bf16.vlgmr.msra.gmra.mxu0 %vm217_vm0, %v168_v16  ;;  %566 = vmatpush3.bf16.msra.mxu1 %v640_v18 }
  0x25   : > { %567 = vmatprep.subr.bf16.mxu1 %v641_v19 }
  0x28   : > { %568 = vmatpush3.bf16.msra.mxu1 %v642_v20 }
  0x29   : > { %569 = vmatprep.subr.bf16.mxu1 %v643_v21 }
  0x2c   : > { %570 = vmatpush3.bf16.msra.mxu1 %v644_v22 }
  0x2d   : > { %571 = vmatprep.subr.bf16.mxu1 %v645_v23 }
  0x30   : > { %572 = vmatpush3.bf16.msra.mxu1 %v646_v24 }
  0x31   : > { %573 = vmatprep.subr.bf16.mxu1 %v647_v25 }
  0x34   : > { %574 = vmatpush3.bf16.msra.mxu1 %v648_v26 }
  0xe4   : > { %v255_v27 = vpop.f32.mrf.mxu0 }
  0xe5   : > { %v262_v28 = vmax.f32 %v255_v27, 0.0 }
  0xe6   : > { %v257_v29 = vpop.f32.mrf.mxu0 }
  0xe7   : > { %v263_v30 = vmax.f32 %v257_v29, 0.0  ;;  %v264_v33 = vpack.c.bf16 %v262_v28, %v262_v28 }
  0xe8   : > { %v259_v31 = vpop.f32.mrf.mxu0 }
  0xe9   : > { %v265_v32 = vpack.c.bf16 %v263_v30, %v263_v30 }
  0xea   : > { %v260_v34 = vpop.f32.mrf.mxu0 }
  0xeb   : > { %426 = vmatprep.mubr.bf16.mxu1 %v265_v32 }
  0xec   : > { %427 = vmatmul.mubr.bf16.vlgmr.msra.gmra.mxu1 %v264_v33 }
 0x1ac   : > { %v575_v35 = vpop.f32.mrf.mxu1 }
 0x1ae   : > { %v576_v36 = vpop.f32.mrf.mxu1 }
 0x1af   : > { %v577_v37 = vadd.f32 %v576_v36, %v575_v35 }
 0x1b0   : > { %v578_v38 = vpop.f32.mrf.mxu1 }
 0x1b1   : > { %v429_v39 = vadd.f32 %v577_v37, %v167_v14 }
 0x1b2   : > { %v579_v40 = vpop.f32.mrf.mxu1 }
 0x1b3   : > { %v434_v41 = vsel %vm217_vm0, %v429_v39, 0.0  ;;  %v438_v42 = vmul.f32 %v429_v39, %v429_v39 }
 0x1b4   : > { %435 = vadd.xlane.f32.xlu0 %v434_v41 }
 0x1b5   : > { %v439_v43 = vsel %vm217_vm0, %v438_v42, 0.0 }
 0x1b8   : > { %440 = vadd.xlane.f32.xlu0 %v439_v43 }
 0x23d   : > { %v436_v44 = vpop.xlane.xlu0 %435 }
 0x23e   : > { %v437_v45 = vmul.f32 0.015625, %v436_v44 }
 0x240   : > { %v443_v47 = vmul.f32 %v437_v45, %v437_v45  ;;  %v446_v52 = vsub.f32 %v429_v39, %v437_v45 }
 0x241   : > { %v441_v46 = vpop.xlane.xlu0 %440 }
 0x242   : > { %v442_v48 = vmul.f32 0.015625, %v441_v46 }
 0x244   : > { %v444_v49 = vsub.f32 %v442_v48, %v443_v47 }
 0x246   : > { %v445_v50 = vmax.f32 %v444_v49, 0.0 }
 0x248   : > { %v447_v51 = vadd.f32 1e-05, %v445_v50 }
 0x24a   : > { %649 = vrsqrt.f32 %v447_v51 }
 0x257   : > { %v650_v53 = vpop.eup %649 }
 0x258   : > { %v449_v54 = vmul.f32 %v650_v53, %v446_v52 }
 0x25a   : > { %450 = vst.msk [vmem:[%s161_s26] sm:$0xff] %vm217_vm0, %v449_v54 }
 0x25b   : > { %664 = shalt.err (!%p661_p3)
}
 0x25c   : > { %s665_s8 = scalar_lea.hbm %s463_s30, 128  ;;  %s669_s11 = scalar_lea.hbm %s901_s3, 256 }
 0x25d   : > { %p666_p4 = scmp.ne.s32.totalorder %s463_s30, %s665_s8  ;;  %p670_p9 = scmp.lt.s32.totalorder %s463_s30, %s901_s3 }
 0x25e   : > { %p671_p10 = scmp.lt.s32.totalorder %s669_s11, %s665_s8 }
 0x25f   : > { %p667_p7 = pnand %p666_p4, %p773_p5 }
 0x260   : > { %p672_p11 = por %p671_p10, %p670_p9 }
 0x261   : > { %p668_p8 = pneg %p667_p7 }
 0x263   : > { %p673_p12 = pnand %p672_p11, %p668_p8 }
 0x265   : > { %676 = shalt.err (!%p673_p12)
}
 0x266   : > { %581 = dma.vmem_to_hbm [thread:$0]  (%p773_p5), %s466_s27, 128, %s463_s30, %s452_s4  }
 0x267 PF: > { %p587_p13 = scmp.ge.s32.totalorder %s711_s15, 2  ;;  %s477_s20 = sand.u32 1, %s699_s12  }
 0x268   : > { %s478_s24 = scalar_lea.sflag [#allocation3], %s477_s20 }
 0x269   : > { %p584_p0 = pnand %p587_p13, %p777_p6 }
 0x26b   : > { %p585_p1 = pneg %p584_p0 }
 0x26d   : > { %694 = dma.done.wait (%p585_p1), %s478_s24, 128  }
 0x26e   : > { %696 = vsyncadd (%p585_p1), %s478_s24, 4294967168  ;;  %p13_p2 = scmp.ge.s32.totalorder %s760_s18, 4   ;;  %s904_s12 = smov %s703_s13 }
 0x26f   : > { %s905_s13 = smov %s707_s14  ;;  %s906_s14 = smov %s771_s21 }
 0x270   : > { %s907_s15 = smov %s760_s18  ;;  %15 = sbr.rel (!%p13_p2) target bundleno = 3 (0x3), region = 67 }
 0x275   :  { %483 = vsyncpa [#allocation3], 1 }
 0x276   :  { %485 = vsyncpa [#allocation3 + $0x1], 1 }

</bundles_post_ra>
